<compile_context>
chip_gen: v7x
topology: tpu7x:2x2x1
jax: 0.10.0
libtpu: 0.0.40
codegen_flags: <defaults>
</compile_context>

<pallas_src>
import functools

import jax
import jax.numpy as jnp
from jax.experimental import pallas as pl
from jax.experimental.pallas import tpu as pltpu


def _round_up(a: int, b: int) -> int:
    return ((a + b - 1) // b) * b


def _cdiv(a: int, b: int) -> int:
    return -(-a // b)


def _pick_tile(dim: int, target: int, align: int = 128) -> int:
    """Largest 128-aligned tile <= target that minimizes padding of `dim`.

    Searches tiles in [target/2, target] and keeps the one whose tiled total
    (ntiles * tile) is smallest, preferring the larger tile on ties. This
    avoids streaming up to (tile - 128) dead weight columns on ragged dims.
    """
    padded = _round_up(max(dim, 1), align)
    target = min(_round_up(max(target, align), align), padded)
    best_t = target
    best_total = _cdiv(padded, target) * target
    t = target - align
    lo = max(align, target // 2)
    while t >= lo:
        total = _cdiv(padded, t) * t
        if total < best_total:
            best_t, best_total = t, total
        t -= align
    return best_t


def _device_config():
    """(device_kind, (tm, tn, tk) targets, vmem_capacity_bytes)."""
    kind = ""
    try:
        kind = jax.devices()[0].device_kind.lower()
    except Exception:
        pass
    vmem_cap = None
    try:
        vmem_cap = int(pltpu.get_tpu_info().vmem_capacity_bytes)
    except Exception:
        vmem_cap = None

    if "v7" in kind:
        tiles = (512, 1024, 512)
        vmem_cap = vmem_cap or (64 << 20)
    elif "v6" in kind:
        tiles = (1024, 1024, 1024)
        vmem_cap = vmem_cap or (128 << 20)
    elif "v5" in kind:
        tiles = (512, 512, 1024)
        vmem_cap = vmem_cap or (128 << 20)
    else:  # unknown / fallback: conservative but still compute-leaning
        tiles = (512, 512, 512)
        vmem_cap = vmem_cap or (64 << 20)
    return kind, tiles, vmem_cap


def _vmem_bytes(tm: int, tn: int, tk: int, itemsize: int) -> int:
    """Double-buffered working set (no accumulator scratch anymore)."""
    return (
        2 * tm * tk * itemsize      # x tiles (double-buffered)
        + 2 * tk * tn * itemsize    # weight tiles (double-buffered)
        + 2 * 8 * tn * 4            # bias slices ((1, tn) pads to (8, tn))
        + 2 * tm * tn * 4           # f32 output tiles (resident accumulator)
    )


def _linear_kernel(x_ref, w_ref, b_ref, o_ref, *, precision):
    """One (tm, tn) f32 output tile, accumulated in place over the K grid axis."""
    k = pl.program_id(2)

    @pl.when(k == 0)
    def _init():
        # Fuse the bias into the resident output tile (once per (i, j) tile).
        o_ref[...] = jnp.broadcast_to(b_ref[...], o_ref.shape)

    # MXU matmul with f32 accumulation directly into the f32 output tile.
    o_ref[...] += jnp.dot(
        x_ref[...], w_ref[...],
        preferred_element_type=jnp.float32,
        precision=precision,
    )


def make_sparse_input_linear(
    weight,
    bias,
    *,
    compute_dtype=jnp.bfloat16,
    tm: int | None = None,
    tn: int | None = None,
    tk: int | None = None,
    precision=None,
):
    """Returns apply(x) = x @ weight + bias (forward of SparseInputLinear).

    The weight cast/pad and bias layout are done ONCE here (parameters are
    fixed across calls), so each forward only streams the prepared arrays.

    weight: (K, D) float32, bias: (D,) float32, x: (N, K) float32 -> (N, D) f32.
    For bit-faithful torch.mm semantics use compute_dtype=jnp.float32
    (optionally precision=jax.lax.Precision.HIGHEST).
    """
    weight = jnp.asarray(weight, jnp.float32)
    bias = jnp.asarray(bias, jnp.float32)
    K, D = weight.shape
    assert bias.shape == (D,), bias.shape

    kind, (tm_d, tn_d, tk_d), vmem_cap = _device_config()
    tm_target = tm if tm is not None else tm_d
    tn_ = _pick_tile(D, tn if tn is not None else tn_d)
    tk_ = _pick_tile(K, tk if tk is not None else tk_d)
    tm_target = _pick_tile(max(tm_target, 128), tm_target)

    itemsize = jnp.dtype(compute_dtype).itemsize
    vmem_budget = int(0.75 * vmem_cap)

    # Shrink-to-fit: reduce tk first (cheapest loss in arithmetic intensity),
    # then tn, then tm, keeping everything 128-aligned.
    while int(1.5 * _vmem_bytes(tm_target, tn_, tk_, itemsize)) > vmem_budget:
        if tk_ > 128:
            tk_ = max(128, (tk_ // 2) // 128 * 128)
        elif tn_ > 128:
            tn_ = max(128, (tn_ // 2) // 128 * 128)
        elif tm_target > 128:
            tm_target = max(128, (tm_target // 2) // 128 * 128)
        else:
            break

    Kp, Dp = _round_up(K, tk_), _round_up(D, tn_)

    # Cached (cast + padded) parameters — no per-call pass over W anymore.
    wc = weight.astype(compute_dtype)
    if (Kp, Dp) != (K, D):
        wc = jnp.pad(wc, ((0, Kp - K), (0, Dp - D)))
    b2d = jnp.pad(bias, (0, Dp - D)).reshape(1, Dp)

    kernel = functools.partial(_linear_kernel, precision=precision)

    def apply(x):
        N, Kx = x.shape
        assert Kx == K, (Kx, K)

        tm_ = _pick_tile(N, tm_target)
        # v7x has 2 TensorCores: if the output grid collapses to one tile,
        # split tm so both cores get work under the "parallel" axes.
        if "v7" in kind and tm_ >= 256 and tm_ % 256 == 0:
            if (_round_up(N, tm_) // tm_) * (Dp // tn_) == 1:
                tm_ //= 2
        Np = _round_up(N, tm_)

        xc = x.astype(compute_dtype)
        if (Np, Kp) != (N, K):
            xc = jnp.pad(xc, ((0, Np - N), (0, Kp - K)))

        grid = (Np // tm_, Dp // tn_, Kp // tk_)

        vmem_limit = min(
            vmem_budget,
            max(32 << 20, int(1.5 * _vmem_bytes(tm_, tn_, tk_, itemsize))),
        )

        cost = pl.CostEstimate(
            flops=2 * N * K * D,
            transcendentals=0,
            bytes_accessed=(N * K + K * D) * itemsize + (N * D + D) * 4,
        )

        out = pl.pallas_call(
            kernel,
            out_shape=jax.ShapeDtypeStruct((Np, Dp), jnp.float32),
            grid_spec=pltpu.PrefetchScalarGridSpec(
                num_scalar_prefetch=0,
                grid=grid,
                in_specs=[
                    pl.BlockSpec((tm_, tk_), lambda i, j, k: (i, k)),  # x tile
                    pl.BlockSpec((tk_, tn_), lambda i, j, k: (k, j)),  # W tile
                    pl.BlockSpec((1, tn_), lambda i, j, k: (0, j)),    # bias
                ],
                out_specs=pl.BlockSpec((tm_, tn_), lambda i, j, k: (i, j)),
            ),
            compiler_params=pltpu.CompilerParams(
                dimension_semantics=("parallel", "parallel", "arbitrary"),
                vmem_limit_bytes=vmem_limit,
            ),
            cost_estimate=cost,
        )(xc, wc, b2d)

        if (Np, Dp) != (N, D):
            out = out[:N, :D]
        return out

    return apply


def sparse_input_linear(x, weight, bias, **kwargs):
    """One-shot convenience wrapper. For repeated calls with fixed parameters
    prefer make_sparse_input_linear (caches the prepared weight/bias)."""
    return make_sparse_input_linear(weight, bias, **kwargs)(x)


if __name__ == "__main__":
    # Small shapes consistent with the module: N dense rows -> out_dim features.
    N, inp_dim, out_dim = 16, 32, 64

    key = jax.random.PRNGKey(0)
    kx, kw, kb = jax.random.split(key, 3)

    # Deterministic init mirroring reset_parameters(): U(-stdv, stdv), stdv = 1/sqrt(out_dim).
    stdv = 1.0 / jnp.sqrt(jnp.float32(out_dim))
    weight = jax.random.uniform(kw, (inp_dim, out_dim), jnp.float32, -stdv, stdv)
    bias = jax.random.uniform(kb, (out_dim,), jnp.float32, -stdv, stdv)
    x = jax.random.normal(kx, (N, inp_dim), jnp.float32)

    y_ref = x @ weight + bias

    # Exact-semantics path (f32 operands, f32 accumulation), cached params.
    fwd_f32 = make_sparse_input_linear(weight, bias, compute_dtype=jnp.float32)
    y_f32 = jax.block_until_ready(fwd_f32(x))
    assert y_f32.shape == (N, out_dim)
    assert jnp.allclose(y_f32, y_ref, atol=1e-5, rtol=1e-5)

    # Default fast path: bf16 operands on the MXU, f32 accumulation + bias.
    fwd_bf16 = make_sparse_input_linear(weight, bias)
    y_bf16 = jax.block_until_ready(fwd_bf16(x))
    assert y_bf16.shape == (N, out_dim)
    assert jnp.allclose(y_bf16, y_ref, atol=3e-2, rtol=3e-2)
    # Second call re-uses the cached (cast + padded) weight.
    y_bf16b = jax.block_until_ready(fwd_bf16(x))
    assert jnp.allclose(y_bf16b, y_bf16)

    # Ragged shapes exercise the pad-to-tile path (no tiny tiles, no mask bugs).
    k2 = jax.random.PRNGKey(1)
    ka, kw2, kb2 = jax.random.split(k2, 3)
    N2, K2d, D2 = 200, 96, 160
    x2 = jax.random.normal(ka, (N2, K2d), jnp.float32)
    w2 = jax.random.uniform(kw2, (K2d, D2), jnp.float32, -0.1, 0.1)
    b2 = jax.random.uniform(kb2, (D2,), jnp.float32, -0.1, 0.1)
    y2 = jax.block_until_ready(
        sparse_input_linear(x2, w2, b2, compute_dtype=jnp.float32)
    )
    assert jnp.allclose(y2, x2 @ w2 + b2, atol=1e-4, rtol=1e-4)

    print("KERNEL_OK")
</pallas_src>

<mosaic_0001>
module attributes {stable_mosaic.version = 11 : i64} {
  func.func @_linear_kernel(%arg0: i32, %arg1: i32, %arg2: i32, %arg3: memref<128x128xf32, #tpu.memory_space<vmem>>, %arg4: memref<128x128xf32, #tpu.memory_space<vmem>>, %arg5: memref<1x128xf32, #tpu.memory_space<vmem>>, %arg6: memref<128x128xf32, #tpu.memory_space<vmem>>) attributes {dimension_semantics = [#tpu.dimension_semantics<parallel>, #tpu.dimension_semantics<parallel>, #tpu.dimension_semantics<arbitrary>], iteration_bounds = array<i64: 1, 1, 1>, scalar_prefetch = 0 : i64, scratch_operands = 0 : i64, tpu.core_type = #tpu.core_type<tc>, window_params = [{transform_indices = @transform_0, window_bounds = array<i64: 128, 128>}, {transform_indices = @transform_1, window_bounds = array<i64: 128, 128>}, {transform_indices = @transform_2, window_bounds = array<i64: 1, 128>}, {transform_indices = @transform_3, window_bounds = array<i64: 128, 128>}]} {
    %c0_i32 = arith.constant 0 : i32
    %0 = arith.cmpi eq, %arg2, %c0_i32 : i32
    %1 = arith.extui %0 : i1 to i32
    %c0_i32_0 = arith.constant 0 : i32
    %2 = arith.cmpi ne, %1, %c0_i32_0 : i32
    scf.if %2 {
      %c0_8 = arith.constant 0 : index
      %c0_9 = arith.constant 0 : index
      %9 = vector.load %arg5[%c0_8, %c0_9] : memref<1x128xf32, #tpu.memory_space<vmem>>, vector<1x128xf32>
      %10 = vector.shape_cast %9 : vector<1x128xf32> to vector<1x128xf32>
      %11 = vector.broadcast %10 : vector<1x128xf32> to vector<128x128xf32>
      %c0_10 = arith.constant 0 : index
      %c0_11 = arith.constant 0 : index
      %12 = vector.load %arg6[%c0_10, %c0_11] : memref<128x128xf32, #tpu.memory_space<vmem>>, vector<128x128xf32>
      tpu.vector_store %arg6[%c0_10, %c0_11], %11 {strides = array<i32>} : memref<128x128xf32, #tpu.memory_space<vmem>>, vector<128x128xf32>,
    } else {
    }
    %c0 = arith.constant 0 : index
    %c0_1 = arith.constant 0 : index
    %3 = vector.load %arg6[%c0, %c0_1] : memref<128x128xf32, #tpu.memory_space<vmem>>, vector<128x128xf32>
    %c0_2 = arith.constant 0 : index
    %c0_3 = arith.constant 0 : index
    %4 = vector.load %arg3[%c0_2, %c0_3] : memref<128x128xf32, #tpu.memory_space<vmem>>, vector<128x128xf32>
    %c0_4 = arith.constant 0 : index
    %c0_5 = arith.constant 0 : index
    %5 = vector.load %arg4[%c0_4, %c0_5] : memref<128x128xf32, #tpu.memory_space<vmem>>, vector<128x128xf32>
    %cst = arith.constant dense<0.000000e+00> : vector<128x128xf32>
    %6 = tpu.matmul %4, %5, %cst {dimension_numbers = #tpu.dot_dimension_numbers<[1], [0], [0], [1], [0, 0, 1, 1], [], []>} : vector<128x128xf32>, vector<128x128xf32>, vector<128x128xf32> -> vector<128x128xf32>
    %7 = arith.addf %3, %6 : vector<128x128xf32>
    %c0_6 = arith.constant 0 : index
    %c0_7 = arith.constant 0 : index
    %8 = vector.load %arg6[%c0_6, %c0_7] : memref<128x128xf32, #tpu.memory_space<vmem>>, vector<128x128xf32>
    tpu.vector_store %arg6[%c0_6, %c0_7], %7 {strides = array<i32>} : memref<128x128xf32, #tpu.memory_space<vmem>>, vector<128x128xf32>,
    return
  }
  func.func @transform_0(%arg0: i32, %arg1: i32, %arg2: i32) -> (i32, i32) {
    %c0_i32 = arith.constant 0 : i32
    return %arg0, %arg2 : i32, i32
  }
  func.func @transform_1(%arg0: i32, %arg1: i32, %arg2: i32) -> (i32, i32) {
    %c0_i32 = arith.constant 0 : i32
    return %arg2, %arg1 : i32, i32
  }
  func.func @transform_2(%arg0: i32, %arg1: i32, %arg2: i32) -> (i32, i32) {
    %c0_i32 = arith.constant 0 : i32
    %c0_i32_0 = arith.constant 0 : i32
    return %c0_i32, %arg1 : i32, i32
  }
  func.func @transform_3(%arg0: i32, %arg1: i32, %arg2: i32) -> (i32, i32) {
    %c0_i32 = arith.constant 0 : i32
    return %arg0, %arg1 : i32, i32
  }
}

</mosaic_0001>

<bundles_post_ra>
// kernel: tpu_custom_call.1
= control target key start
LH: loop header
LB: loop body
LE: loop exit
PB: predicated region body
PF: predicated region fallthrough
CT: control target
= control target key end

     0   :  { %8 = vsyncpa [#allocation3], 0  ;;  %s600_s0 = inlined_call_operand.hbm [shape: f32[128,128], index: 0, kind: input, shape index: {}]   ;;  %s601_s1 = inlined_call_operand.hbm [shape: f32[128,128], index: 1, kind: input, shape index: {}]   ;;  %s602_s2 = inlined_call_operand.vmem [shape: f32[1,128], index: 2, kind: input, shape index: {}]   ;;  %s603_s3 = inlined_call_operand.hbm [shape: f32[128,128], index: 3, kind: output, shape index: {}]  }
   0x1   :  { %9 = vsyncpa [#allocation6], 0 }
   0x2   :  { %10 = vsyncpa [#allocation4], 0  ;;  %s527_s12 = smov [#allocation2]   ;;  %s455_s16 = scalar_lea.hbm %s600_s0, 2048 }
   0x3   :  { %s16_s13 = sshll.u32 %s527_s12, 4  ;;  %p456_p0 = scmp.ne.s32.totalorder %s600_s0, %s455_s16  ;;  %s17_s13 = int_to_ptr.vmem [resolvable:$true] %s16_s13 }
   0x4   :  { %p459_p1 = scmp.lt.u32.totalorder %s455_s16, %s600_s0 }
   0x6   :  { %p461_p2 = pnand %p459_p1, %p456_p0 }
   0x8   :  { %464 = shalt.err (!%p461_p2)
}
   0x9   :  { %s465_s21 = scalar_lea.vmem %s17_s13, 2048  ;;  %p470_p4 = scmp.lt.s32.totalorder %s17_s13, %s17_s13 }
   0xa   :  { %p466_p3 = scmp.ne.s32.totalorder %s17_s13, %s465_s21  ;;  %p471_p5 = scmp.lt.s32.totalorder %s465_s21, %s465_s21 }
   0xc   :  { %p472_p6 = por %p471_p5, %p470_p4 }
   0xe   :  { %p473_p7 = pnand %p472_p6, %p466_p3 }
  0x10   :  { %476 = shalt.err (!%p473_p7)
}
  0x11   :  { %s528_s22 = smov 128   ;;  %s529_s23 = smov 8  }
  0x12   :  { %22 = dma.hbm_to_vmem [thread:$0]  %s600_s0, 2048, %s17_s13, [#allocation3], %s528_s22, %s528_s22, %s529_s23  }
  0x13   :  { %s530_s26 = smov [#allocation5]   ;;  %s477_s30 = scalar_lea.hbm %s601_s1, 2048 }
  0x14   :  { %s28_s27 = sshll.u32 %s530_s26, 4  ;;  %p478_p8 = scmp.ne.s32.totalorder %s601_s1, %s477_s30  ;;  %s29_s27 = int_to_ptr.vmem [resolvable:$true] %s28_s27 }
  0x15   :  { %p481_p9 = scmp.lt.u32.totalorder %s477_s30, %s601_s1 }
  0x17   :  { %p483_p10 = pnand %p481_p9, %p478_p8 }
  0x19   :  { %486 = shalt.err (!%p483_p10)
}
  0x1a   :  { %s487_s8 = scalar_lea.vmem %s29_s27, 2048  ;;  %p492_p12 = scmp.lt.s32.totalorder %s29_s27, %s29_s27 }
  0x1b   :  { %p488_p11 = scmp.ne.s32.totalorder %s29_s27, %s487_s8  ;;  %p493_p13 = scmp.lt.s32.totalorder %s487_s8, %s487_s8 }
  0x1d   :  { %p494_p0 = por %p493_p13, %p492_p12 }
  0x1f   :  { %p495_p1 = pnand %p494_p0, %p488_p11 }
  0x21   :  { %498 = shalt.err (!%p495_p1)
}
  0x22   :  { %34 = dma.hbm_to_vmem [thread:$0]  %s601_s1, 2048, %s29_s27, [#allocation6], %s528_s22, %s528_s22, %s529_s23  }
  0x23   :  { %521 = dma.done.wait [#allocation3], 2048  }
  0x24   :  { %522 = vsyncadd [#allocation3], 4294965248 }
  0x25   :  { %523 = dma.done.wait [#allocation6], 2048  }
  0x26   :  { %524 = vsyncadd [#allocation6], 4294965248  ;;  %v102_v0 = vld [vmem:[#allocation5] sm:$0xff]  ;;  %v103_v1 = vld [vmem:[#allocation5 + $0x8] sm:$0xff] }
  0x27   :  { %v104_v2 = vld [vmem:[#allocation5 + $0x10] sm:$0xff]  ;;  %v402_v3 = vpack.c.bf16 %v103_v1, %v102_v0  ;;  %v105_v4 = vld [vmem:[#allocation5 + $0x18] sm:$0xff]  ;;  %v106_v6 = vld [vmem:[#allocation5 + $0x20] sm:$0xff] }
  0x28   :  { %v406_v5 = vpack.c.bf16 %v105_v4, %v104_v2  ;;  %v107_v7 = vld [vmem:[#allocation5 + $0x28] sm:$0xff]  ;;  %v86_v9 = vld [vmem:[#allocation2] sm:$0xff]  ;;  %v108_v11 = vld [vmem:[#allocation5 + $0x30] sm:$0xff] }
  0x29   :  { %403 = vmatprep.subr.bf16.mxu0 %v402_v3  ;;  %434 = vmatprep.subr.bf16.mxu1 %v402_v3  ;;  %v410_v8 = vpack.c.bf16 %v107_v7, %v106_v6  ;;  %v94_v10 = vld [vmem:[#allocation2 + $0x40] sm:$0xff]  ;;  %v109_v12 = vld [vmem:[#allocation5 + $0x38] sm:$0xff]  ;;  %v111_v15 = vld [vmem:[#allocation5 + $0x48] sm:$0xff] }
  0x2a   :  { %405 = vmatpush3.bf16.msra.mxu0 %v402_v3  ;;  %442 = vmatpush3.bf16.msra.mxu1 %v402_v3  ;;  %v414_v13 = vpack.c.bf16 %v109_v12, %v108_v11  ;;  %v110_v14 = vld [vmem:[#allocation5 + $0x40] sm:$0xff]  ;;  %v112_v17 = vld [vmem:[#allocation5 + $0x50] sm:$0xff]  ;;  %v113_v18 = vld [vmem:[#allocation5 + $0x58] sm:$0xff] }
  0x2b   :  { %407 = vmatprep.subr.bf16.mxu0 %v406_v5  ;;  %435 = vmatprep.subr.bf16.mxu1 %v406_v5  ;;  %v418_v16 = vpack.c.bf16 %v111_v15, %v110_v14  ;;  %v422_v19 = vpack.c.bf16 %v113_v18, %v112_v17  ;;  %v114_v20 = vld [vmem:[#allocation5 + $0x60] sm:$0xff]  ;;  %v115_v21 = vld [vmem:[#allocation5 + $0x68] sm:$0xff]  ;;  %v116_v23 = vld [vmem:[#allocation5 + $0x70] sm:$0xff] }
  0x2c   :  { %378 = vmatprep.mubr.f32.mxu0 %v86_v9  ;;  %390 = vmatprep.mubr.f32.mxu1 %v94_v10  ;;  %v426_v22 = vpack.c.bf16 %v115_v21, %v114_v20  ;;  %v117_v24 = vld [vmem:[#allocation5 + $0x78] sm:$0xff]  ;;  %v87_v26 = vld [vmem:[#allocation2 + $0x8] sm:$0xff]  ;;  %v88_v28 = vld [vmem:[#allocation2 + $0x10] sm:$0xff] }
  0x2d   :  { %v430_v25 = vpack.c.bf16 %v117_v24, %v116_v23  ;;  %v95_v27 = vld [vmem:[#allocation2 + $0x48] sm:$0xff]  ;;  %v96_v29 = vld [vmem:[#allocation2 + $0x50] sm:$0xff]  ;;  %v89_v30 = vld [vmem:[#allocation2 + $0x18] sm:$0xff] }
  0x2e   :  { %409 = vmatpush3.bf16.msra.mxu0 %v406_v5  ;;  %443 = vmatpush3.bf16.msra.mxu1 %v406_v5  ;;  %v97_v31 = vld [vmem:[#allocation2 + $0x58] sm:$0xff]  ;;  %v90_v32 = vld [vmem:[#allocation2 + $0x20] sm:$0xff]  ;;  %v91_v34 = vld [vmem:[#allocation2 + $0x28] sm:$0xff] }
  0x2f   :  { %411 = vmatprep.subr.bf16.mxu0 %v410_v8  ;;  %436 = vmatprep.subr.bf16.mxu1 %v410_v8  ;;  %v98_v33 = vld [vmem:[#allocation2 + $0x60] sm:$0xff]  ;;  %v99_v35 = vld [vmem:[#allocation2 + $0x68] sm:$0xff]  ;;  %v92_v36 = vld [vmem:[#allocation2 + $0x30] sm:$0xff] }
  0x30   :  { %v100_v37 = vld [vmem:[#allocation2 + $0x70] sm:$0xff]  ;;  %v93_v38 = vld [vmem:[#allocation2 + $0x38] sm:$0xff]  ;;  %v313_v40 = vld [vmem:[%s602_s2] ss:$0 sm:$0xff]  ;;  %s531_s2 = smov [#allocation7]  }
  0x31   :  { %v101_v39 = vld [vmem:[#allocation2 + $0x78] sm:$0xff]  ;;  %s300_s11 = sshll.u32 %s531_s2, 4  ;;  %s301_s11 = int_to_ptr.vmem [resolvable:$true] %s300_s11 }
  0x32   :  { %413 = vmatpush3.bf16.msra.mxu0 %v410_v8  ;;  %444 = vmatpush3.bf16.msra.mxu1 %v410_v8  ;;  %s499_s12 = scalar_lea.vmem %s301_s11, 2048  ;;  %p504_p3 = scmp.lt.s32.totalorder %s301_s11, %s301_s11 }
  0x33   :  { %415 = vmatprep.subr.bf16.mxu0 %v414_v13  ;;  %437 = vmatprep.subr.bf16.mxu1 %v414_v13  ;;  %p500_p2 = scmp.ne.s32.totalorder %s301_s11, %s499_s12  ;;  %p505_p4 = scmp.lt.s32.totalorder %s499_s12, %s499_s12 }
  0x35   :  { %p506_p5 = por %p505_p4, %p504_p3 }
  0x36   :  { %417 = vmatpush3.bf16.msra.mxu0 %v414_v13  ;;  %445 = vmatpush3.bf16.msra.mxu1 %v414_v13 }
  0x37   :  { %419 = vmatprep.subr.bf16.mxu0 %v418_v16  ;;  %438 = vmatprep.subr.bf16.mxu1 %v418_v16  ;;  %p507_p6 = pnand %p506_p5, %p500_p2 }
  0x3a   :  { %421 = vmatpush3.bf16.msra.mxu0 %v418_v16  ;;  %446 = vmatpush3.bf16.msra.mxu1 %v418_v16 }
  0x3b   :  { %423 = vmatprep.subr.bf16.mxu0 %v422_v19  ;;  %439 = vmatprep.subr.bf16.mxu1 %v422_v19 }
  0x3e   :  { %425 = vmatpush3.bf16.msra.mxu0 %v422_v19  ;;  %447 = vmatpush3.bf16.msra.mxu1 %v422_v19 }
  0x3f   :  { %427 = vmatprep.subr.bf16.mxu0 %v426_v22  ;;  %440 = vmatprep.subr.bf16.mxu1 %v426_v22 }
  0x42   :  { %429 = vmatpush3.bf16.msra.mxu0 %v426_v22  ;;  %448 = vmatpush3.bf16.msra.mxu1 %v426_v22 }
  0x43   :  { %431 = vmatprep.subr.bf16.mxu0 %v430_v25  ;;  %441 = vmatprep.subr.bf16.mxu1 %v430_v25 }
  0x46   :  { %433 = vmatpush3.bf16.msra.mxu0 %v430_v25  ;;  %449 = vmatpush3.bf16.msra.mxu1 %v430_v25 }
  0x49   :  { %379 = vmatmul.mubr.f32.vlgmr.msra.gmra.mrb[0].mxu0 %v87_v26  ;;  %391 = vmatmul.mubr.f32.vlgmr.msra.gmra.mrb[0].mxu1 %v95_v27 }
  0x4a   :  { %381 = vmatprep.mubr.f32.mxu0 %v88_v28  ;;  %393 = vmatprep.mubr.f32.mxu1 %v96_v29 }
  0x4d   :  { %382 = vmatmul.mubr.f32.gmra.mrb[2].mxu0 %v89_v30  ;;  %394 = vmatmul.mubr.f32.gmra.mrb[2].mxu1 %v97_v31 }
  0x4e   :  { %384 = vmatprep.mubr.f32.mxu0 %v90_v32  ;;  %396 = vmatprep.mubr.f32.mxu1 %v98_v33 }
  0x51   :  { %385 = vmatmul.mubr.f32.gmra.mrb[4].mxu0 %v91_v34  ;;  %397 = vmatmul.mubr.f32.gmra.mrb[4].mxu1 %v99_v35 }
  0x52   :  { %387 = vmatprep.mubr.f32.mxu0 %v92_v36  ;;  %399 = vmatprep.mubr.f32.mxu1 %v100_v37 }
  0x55   :  { %388 = vmatmul.mubr.f32.gmra.mrb[6].mxu0 %v93_v38  ;;  %400 = vmatmul.mubr.f32.gmra.mrb[6].mxu1 %v101_v39 }
 0x11c   :  { %v380_v41 = vpop.f32.mrb[0].mxu0  ;;  %v392_v42 = vpop.f32.mrb[0].mxu1 }
 0x11d   :  { %v264_v43 = vadd.f32 %v380_v41, %v313_v40  ;;  %v272_v44 = vadd.f32 %v392_v42, %v313_v40  ;;  %v184_v45 = vpop.f32.mrb[1].mxu0  ;;  %v224_v46 = vpop.f32.mrb[1].mxu1 }
 0x11e   :  { %v263_v47 = vadd.f32 %v313_v40, %v184_v45  ;;  %v271_v48 = vadd.f32 %v313_v40, %v224_v46 }
 0x11f   :  { %280 = vst [vmem:[#allocation7 + $0x8] sm:$0xff] %v264_v43  ;;  %288 = vst [vmem:[#allocation7 + $0x48] sm:$0xff] %v272_v44 }
 0x120   :  { %279 = vst [vmem:[#allocation7] sm:$0xff] %v263_v47  ;;  %287 = vst [vmem:[#allocation7 + $0x40] sm:$0xff] %v271_v48  ;;  %v383_v49 = vpop.f32.mrb[2].mxu0  ;;  %v395_v50 = vpop.f32.mrb[2].mxu1 }
 0x121   :  { %v266_v51 = vadd.f32 %v383_v49, %v313_v40  ;;  %v274_v52 = vadd.f32 %v395_v50, %v313_v40  ;;  %v194_v53 = vpop.f32.mrb[3].mxu0  ;;  %v234_v54 = vpop.f32.mrb[3].mxu1 }
 0x122   :  { %v265_v55 = vadd.f32 %v313_v40, %v194_v53  ;;  %v273_v56 = vadd.f32 %v313_v40, %v234_v54 }
 0x123   :  { %282 = vst [vmem:[#allocation7 + $0x18] sm:$0xff] %v266_v51  ;;  %290 = vst [vmem:[#allocation7 + $0x58] sm:$0xff] %v274_v52 }
 0x124   :  { %281 = vst [vmem:[#allocation7 + $0x10] sm:$0xff] %v265_v55  ;;  %289 = vst [vmem:[#allocation7 + $0x50] sm:$0xff] %v273_v56  ;;  %v386_v57 = vpop.f32.mrb[4].mxu0  ;;  %v398_v58 = vpop.f32.mrb[4].mxu1 }
 0x125   :  { %v268_v59 = vadd.f32 %v386_v57, %v313_v40  ;;  %v276_v60 = vadd.f32 %v398_v58, %v313_v40  ;;  %v204_v61 = vpop.f32.mrb[5].mxu0  ;;  %v244_v62 = vpop.f32.mrb[5].mxu1 }
 0x126   :  { %v267_v63 = vadd.f32 %v313_v40, %v204_v61  ;;  %v275_v0 = vadd.f32 %v313_v40, %v244_v62 }
 0x127   :  { %284 = vst [vmem:[#allocation7 + $0x28] sm:$0xff] %v268_v59  ;;  %292 = vst [vmem:[#allocation7 + $0x68] sm:$0xff] %v276_v60 }
 0x128   :  { %283 = vst [vmem:[#allocation7 + $0x20] sm:$0xff] %v267_v63  ;;  %291 = vst [vmem:[#allocation7 + $0x60] sm:$0xff] %v275_v0  ;;  %v389_v1 = vpop.f32.mrb[6].mxu0  ;;  %v401_v2 = vpop.f32.mrb[6].mxu1 }
 0x129   :  { %v270_v3 = vadd.f32 %v389_v1, %v313_v40  ;;  %v278_v4 = vadd.f32 %v401_v2, %v313_v40  ;;  %v214_v5 = vpop.f32.mrb[7].mxu0  ;;  %v254_v6 = vpop.f32.mrb[7].mxu1 }
 0x12a   :  { %v269_v7 = vadd.f32 %v313_v40, %v214_v5  ;;  %v277_v8 = vadd.f32 %v313_v40, %v254_v6 }
 0x12b   :  { %286 = vst [vmem:[#allocation7 + $0x38] sm:$0xff] %v270_v3  ;;  %294 = vst [vmem:[#allocation7 + $0x78] sm:$0xff] %v278_v4 }
 0x12c   :  { %285 = vst [vmem:[#allocation7 + $0x30] sm:$0xff] %v269_v7  ;;  %293 = vst [vmem:[#allocation7 + $0x70] sm:$0xff] %v277_v8 }
 0x12d   :  { %510 = shalt.err (!%p507_p6)
}
 0x12e   :  { %s511_s15 = scalar_lea.hbm %s603_s3, 2048 }
 0x12f   :  { %p512_p7 = scmp.ne.s32.totalorder %s603_s3, %s511_s15  ;;  %p515_p8 = scmp.lt.u32.totalorder %s511_s15, %s603_s3 }
 0x131   :  { %p517_p9 = pnand %p515_p8, %p512_p7 }
 0x133   :  { %520 = shalt.err (!%p517_p9)
}
 0x134   :  { %306 = dma.vmem_to_hbm [thread:$0]  %s301_s11, 2048, %s603_s3, [#allocation4], %s528_s22, %s528_s22, %s529_s23  }
 0x135   :  { %525 = dma.done.wait [#allocation4], 2048  }
 0x136   :  { %526 = vsyncadd [#allocation4], 4294965248 }
 0x137   :  { %310 = vsyncpa [#allocation3], 1 }
 0x138   :  { %311 = vsyncpa [#allocation6], 1 }
 0x139   :  { %312 = vsyncpa [#allocation4], 1 }

</bundles_post_ra>
